<compile_context>
chip_gen: v6e
topology: v6e:2x2x1
jax: 0.10.0
libtpu: 0.0.40
codegen_flags: <defaults>
</compile_context>

<pallas_src>
import functools

import jax
import jax.numpy as jnp
from jax import lax
from jax.experimental import pallas as pl
from jax.experimental.pallas import tpu as pltpu


# --------------------------- fused kernel ----------------------------------
def _fused_kernel(
    x_ref,                                   # (bc, seq, W)
    w_ir_ref, w_iz_ref, w_in_ref,            # (W, H)  pre-transposed, per gate
    w_hr_ref, w_hz_ref, w_hn_ref,            # (H, H)  pre-transposed, per gate
    b_ir_ref, b_iz_ref, b_in_ref,            # (1, H)
    b_hr_ref, b_hz_ref, b_hn_ref,            # (1, H)
    w_k_ref, w_q_ref,                        # (N, N)  pre-transposed
    b_k_ref, b_q_ref,                        # (1, N)
    out_ref,                                 # (N, N)  accumulator across grid
    gi_r_s, gi_z_s, gi_n_s,                  # (seq, H) VMEM scratch
    y_s,                                     # (seq, H) VMEM scratch (all hidden states)
    h_s,                                     # (1, H)   VMEM scratch (current hidden)
    *, inv_batch,
):
    g = pl.program_id(0)
    bc, seq, _ = x_ref.shape

    @pl.when(g == 0)
    def _():
        out_ref[...] = jnp.zeros_like(out_ref)

    # Hoist weight loads once per grid step.
    w_hr = w_hr_ref[...]
    w_hz = w_hz_ref[...]
    w_hn = w_hn_ref[...]
    b_hr = b_hr_ref[...]
    b_hz = b_hz_ref[...]
    b_hn = b_hn_ref[...]
    w_k_t = w_k_ref[...]
    w_q_t = w_q_ref[...]
    b_k = b_k_ref[...]
    b_q = b_q_ref[...]

    for i in range(bc):                      # static unroll over batch rows in this block
        x2d = x_ref[i]                       # (seq, W)

        # --- hoisted input projections: one large matmul per gate, outside the loop ---
        gi_r_s[...] = jnp.dot(x2d, w_ir_ref[...],
                              preferred_element_type=jnp.float32) + b_ir_ref[...]
        gi_z_s[...] = jnp.dot(x2d, w_iz_ref[...],
                              preferred_element_type=jnp.float32) + b_iz_ref[...]
        gi_n_s[...] = jnp.dot(x2d, w_in_ref[...],
                              preferred_element_type=jnp.float32) + b_in_ref[...]

        h_s[...] = jnp.zeros_like(h_s)

        # --- serial GRU recurrence: only hidden-side matmuls + gates on the hot path ---
        def step(t, carry):
            h = h_s[...]                                             # (1, H)
            gh_r = jnp.dot(h, w_hr, preferred_element_type=jnp.float32) + b_hr
            gh_z = jnp.dot(h, w_hz, preferred_element_type=jnp.float32) + b_hz
            gh_n = jnp.dot(h, w_hn, preferred_element_type=jnp.float32) + b_hn
            r = jax.nn.sigmoid(gi_r_s[pl.ds(t, 1), :] + gh_r)
            z = jax.nn.sigmoid(gi_z_s[pl.ds(t, 1), :] + gh_z)
            n = jnp.tanh(gi_n_s[pl.ds(t, 1), :] + r * gh_n)
            h_new = (1.0 - z) * n + z * h
            h_s[...] = h_new
            y_s[pl.ds(t, 1), :] = h_new                              # keep in VMEM
            return carry

        lax.fori_loop(0, seq, step, 0)

        # --- graph attention for this batch row (all data already in VMEM) ---
        y = y_s[...]                          # (seq, H) hidden states
        x_gat = y.T                           # (H, seq) == (N, N): the permute(0,2,1)
        k = jnp.dot(x_gat, w_k_t, preferred_element_type=jnp.float32) + b_k
        q = jnp.dot(x_gat, w_q_t, preferred_element_type=jnp.float32) + b_q
        # s = q @ k^T (contract last dims; MXU-native transposed-RHS matmul)
        s = lax.dot_general(q, k, (((1,), (1,)), ((), ())),
                            preferred_element_type=jnp.float32)
        s_max = jnp.max(s, axis=-1, keepdims=True)
        e = jnp.exp(s - s_max)
        denom = jnp.sum(e, axis=-1, keepdims=True)
        # NOTE: pl.reciprocal(..., approx=True) would offload to the EUP but loosens
        # accuracy beyond the 1e-4 check used below; keep the exact reciprocal.
        attn = e * pl.reciprocal(denom, approx=False)
        out_ref[...] += attn

    @pl.when(g == pl.num_programs(0) - 1)
    def _():
        out_ref[...] = out_ref[...] * inv_batch


# ------------------------------ wrapper ------------------------------------
def latent_correlation_forward(x, p, *, batch_block=1):
    """x: (B, window, node_cnt) -> (node_cnt, node_cnt) batch-averaged attention."""
    B, W, N = x.shape
    H = N
    assert B % batch_block == 0, "batch_block must divide batch"
    bc = batch_block

    # (B, W, N) -> (B, seq=N, W): each grid step grabs a contiguous block of batch rows.
    xs = jnp.transpose(x, (0, 2, 1)).astype(jnp.float32)

    f32 = lambda a: a.astype(jnp.float32)
    w_ih, w_hh = f32(p['w_ih']), f32(p['w_hh'])
    b_ih, b_hh = f32(p['b_ih']), f32(p['b_hh'])
    # Pre-split per gate (PyTorch order r|z|n) and pre-transpose -> lane-aligned (·, H).
    w_ir_t, w_iz_t, w_in_t = w_ih[:H].T, w_ih[H:2 * H].T, w_ih[2 * H:].T
    w_hr_t, w_hz_t, w_hn_t = w_hh[:H].T, w_hh[H:2 * H].T, w_hh[2 * H:].T
    b_ir, b_iz, b_in = (b_ih[:H].reshape(1, H), b_ih[H:2 * H].reshape(1, H),
                        b_ih[2 * H:].reshape(1, H))
    b_hr, b_hz, b_hn = (b_hh[:H].reshape(1, H), b_hh[H:2 * H].reshape(1, H),
                        b_hh[2 * H:].reshape(1, H))
    w_k_t, w_q_t = f32(p['w_k']).T, f32(p['w_q']).T
    b_k2, b_q2 = f32(p['b_k']).reshape(1, N), f32(p['b_q']).reshape(1, N)

    weights = (w_ir_t, w_iz_t, w_in_t, w_hr_t, w_hz_t, w_hn_t,
               b_ir, b_iz, b_in, b_hr, b_hz, b_hn, w_k_t, w_q_t, b_k2, b_q2)
    weight_specs = [pl.BlockSpec(a.shape, lambda g: (0, 0)) for a in weights]

    # Rough advisory cost estimate for XLA scheduling around the custom call.
    flops = B * (3 * 2 * N * W * H          # hoisted input projections
                 + N * 3 * 2 * H * H        # recurrent hidden matmuls
                 + 3 * 2 * N * N * N)       # k, q, q@k^T
    transcendentals = B * (3 * N * H + N * N)
    bytes_accessed = 4 * (B * N * W + 3 * W * H + 3 * H * H + 6 * H
                          + 2 * N * N + 2 * N + N * N)

    kernel = functools.partial(_fused_kernel, inv_batch=1.0 / B)

    return pl.pallas_call(
        kernel,
        out_shape=jax.ShapeDtypeStruct((N, N), jnp.float32),
        grid=(B // bc,),
        in_specs=[pl.BlockSpec((bc, N, W), lambda g: (g, 0, 0))] + weight_specs,
        out_specs=pl.BlockSpec((N, N), lambda g: (0, 0)),
        scratch_shapes=[
            pltpu.VMEM((N, H), jnp.float32),   # gi_r (whole sequence)
            pltpu.VMEM((N, H), jnp.float32),   # gi_z
            pltpu.VMEM((N, H), jnp.float32),   # gi_n
            pltpu.VMEM((N, H), jnp.float32),   # y: all hidden states (stays in VMEM)
            pltpu.VMEM((1, H), jnp.float32),   # h: current hidden
        ],
        compiler_params=pltpu.CompilerParams(
            # Output block accumulates across the batch axis -> must be "arbitrary".
            dimension_semantics=("arbitrary",),
        ),
        cost_estimate=pl.CostEstimate(flops=flops, transcendentals=transcendentals,
                                      bytes_accessed=bytes_accessed),
    )(xs, *weights)


# ---------------------------- pure-JAX reference ---------------------------
def ref_forward(x, p):
    N = p['w_hh'].shape[1]
    xs = jnp.transpose(x, (2, 0, 1)).astype(jnp.float32)          # (N, B, W)
    B = xs.shape[1]
    h = jnp.zeros((B, N), jnp.float32)
    outs = []
    for t in range(xs.shape[0]):
        gi = xs[t] @ p['w_ih'].T + p['b_ih']
        gh = h @ p['w_hh'].T + p['b_hh']
        r = jax.nn.sigmoid(gi[:, :N] + gh[:, :N])
        z = jax.nn.sigmoid(gi[:, N:2 * N] + gh[:, N:2 * N])
        n = jnp.tanh(gi[:, 2 * N:] + r * gh[:, 2 * N:])
        h = (1.0 - z) * n + z * h
        outs.append(h)
    out = jnp.stack(outs, 0)                                      # (N, B, N)
    inp = jnp.transpose(out, (1, 0, 2))                           # (B, N, N)
    xg = jnp.transpose(inp, (0, 2, 1))                            # (B, N, N)
    k = xg @ p['w_k'].T + p['b_k']
    q = xg @ p['w_q'].T + p['b_q']
    s = jnp.einsum('bio,bjo->bij', q, k)
    attn = jax.nn.softmax(s, axis=-1)
    return jnp.mean(attn, axis=0)


def init_params(key, window, node_cnt):
    H = node_cnt
    ks = jax.random.split(key, 8)
    s_gru = 1.0 / (H ** 0.5)
    s_lin = 1.0 / (node_cnt ** 0.5)
    u = lambda k, shape, s: jax.random.uniform(k, shape, jnp.float32, -s, s)
    return {
        'w_ih': u(ks[0], (3 * H, window), s_gru),
        'w_hh': u(ks[1], (3 * H, H), s_gru),
        'b_ih': u(ks[2], (3 * H,), s_gru),
        'b_hh': u(ks[3], (3 * H,), s_gru),
        'w_k': u(ks[4], (node_cnt, node_cnt), s_lin),
        'b_k': u(ks[5], (node_cnt,), s_lin),
        'w_q': u(ks[6], (node_cnt, node_cnt), s_lin),
        'b_q': u(ks[7], (node_cnt,), s_lin),
    }


if __name__ == "__main__":
    B, window, node_cnt = 2, 8, 16
    key = jax.random.PRNGKey(0)
    k_x, k_p = jax.random.split(key)
    x = jax.random.normal(k_x, (B, window, node_cnt), jnp.float32)
    params = init_params(k_p, window, node_cnt)

    # batch_block=1 -> grid=(2,), exercising the accumulate / finalize path.
    out = jax.block_until_ready(latent_correlation_forward(x, params, batch_block=1))
    ref = jax.block_until_ready(ref_forward(x, params))

    assert out.shape == (node_cnt, node_cnt)
    assert jnp.allclose(out, ref, atol=1e-4, rtol=1e-4), \
        f"max abs diff {jnp.max(jnp.abs(out - ref))}"
    print("KERNEL_OK")
</pallas_src>

<mosaic_0001>
module attributes {stable_mosaic.version = 11 : i64} {
  func.func @_fused_kernel(%arg0: i32, %arg1: memref<1x16x8xf32, #tpu.memory_space<vmem>>, %arg2: memref<8x16xf32, #tpu.memory_space<vmem>>, %arg3: memref<8x16xf32, #tpu.memory_space<vmem>>, %arg4: memref<8x16xf32, #tpu.memory_space<vmem>>, %arg5: memref<16x16xf32, #tpu.memory_space<vmem>>, %arg6: memref<16x16xf32, #tpu.memory_space<vmem>>, %arg7: memref<16x16xf32, #tpu.memory_space<vmem>>, %arg8: memref<1x16xf32, #tpu.memory_space<vmem>>, %arg9: memref<1x16xf32, #tpu.memory_space<vmem>>, %arg10: memref<1x16xf32, #tpu.memory_space<vmem>>, %arg11: memref<1x16xf32, #tpu.memory_space<vmem>>, %arg12: memref<1x16xf32, #tpu.memory_space<vmem>>, %arg13: memref<1x16xf32, #tpu.memory_space<vmem>>, %arg14: memref<16x16xf32, #tpu.memory_space<vmem>>, %arg15: memref<16x16xf32, #tpu.memory_space<vmem>>, %arg16: memref<1x16xf32, #tpu.memory_space<vmem>>, %arg17: memref<1x16xf32, #tpu.memory_space<vmem>>, %arg18: memref<16x16xf32, #tpu.memory_space<vmem>>, %arg19: memref<16x16xf32, #tpu.memory_space<vmem>>, %arg20: memref<16x16xf32, #tpu.memory_space<vmem>>, %arg21: memref<16x16xf32, #tpu.memory_space<vmem>>, %arg22: memref<16x16xf32, #tpu.memory_space<vmem>>, %arg23: memref<1x16xf32, #tpu.memory_space<vmem>>) attributes {dimension_semantics = [#tpu.dimension_semantics<arbitrary>], iteration_bounds = array<i64: 2>, scalar_prefetch = 0 : i64, scratch_operands = 5 : i64, tpu.core_type = #tpu.core_type<tc>, window_params = [{transform_indices = @transform_0, window_bounds = array<i64: 1, 16, 8>}, {pipeline_mode = #tpu.pipeline_mode<synchronous>, transform_indices = @transform_1, window_bounds = array<i64: 8, 16>}, {pipeline_mode = #tpu.pipeline_mode<synchronous>, transform_indices = @transform_2, window_bounds = array<i64: 8, 16>}, {pipeline_mode = #tpu.pipeline_mode<synchronous>, transform_indices = @transform_3, window_bounds = array<i64: 8, 16>}, {pipeline_mode = #tpu.pipeline_mode<synchronous>, transform_indices = @transform_4, window_bounds = array<i64: 16, 16>}, {pipeline_mode = #tpu.pipeline_mode<synchronous>, transform_indices = @transform_5, window_bounds = array<i64: 16, 16>}, {pipeline_mode = #tpu.pipeline_mode<synchronous>, transform_indices = @transform_6, window_bounds = array<i64: 16, 16>}, {pipeline_mode = #tpu.pipeline_mode<synchronous>, transform_indices = @transform_7, window_bounds = array<i64: 1, 16>}, {pipeline_mode = #tpu.pipeline_mode<synchronous>, transform_indices = @transform_8, window_bounds = array<i64: 1, 16>}, {pipeline_mode = #tpu.pipeline_mode<synchronous>, transform_indices = @transform_9, window_bounds = array<i64: 1, 16>}, {pipeline_mode = #tpu.pipeline_mode<synchronous>, transform_indices = @transform_10, window_bounds = array<i64: 1, 16>}, {pipeline_mode = #tpu.pipeline_mode<synchronous>, transform_indices = @transform_11, window_bounds = array<i64: 1, 16>}, {pipeline_mode = #tpu.pipeline_mode<synchronous>, transform_indices = @transform_12, window_bounds = array<i64: 1, 16>}, {pipeline_mode = #tpu.pipeline_mode<synchronous>, transform_indices = @transform_13, window_bounds = array<i64: 16, 16>}, {pipeline_mode = #tpu.pipeline_mode<synchronous>, transform_indices = @transform_14, window_bounds = array<i64: 16, 16>}, {pipeline_mode = #tpu.pipeline_mode<synchronous>, transform_indices = @transform_15, window_bounds = array<i64: 1, 16>}, {pipeline_mode = #tpu.pipeline_mode<synchronous>, transform_indices = @transform_16, window_bounds = array<i64: 1, 16>}, {pipeline_mode = #tpu.pipeline_mode<synchronous>, transform_indices = @transform_17, window_bounds = array<i64: 16, 16>}]} {
    %c0_i32 = arith.constant 0 : i32
    %0 = arith.cmpi eq, %arg0, %c0_i32 : i32
    %1 = arith.extui %0 : i1 to i32
    %c0_i32_0 = arith.constant 0 : i32
    %2 = arith.cmpi ne, %1, %c0_i32_0 : i32
    scf.if %2 {
      %cst_61 = arith.constant 0.000000e+00 : f32
      %61 = vector.broadcast %cst_61 : f32 to vector<16x16xf32>
      %c0_62 = arith.constant 0 : index
      %c0_63 = arith.constant 0 : index
      %62 = vector.load %arg18[%c0_62, %c0_63] : memref<16x16xf32, #tpu.memory_space<vmem>>, vector<16x16xf32>
      tpu.vector_store %arg18[%c0_62, %c0_63], %61 {strides = array<i32>} : memref<16x16xf32, #tpu.memory_space<vmem>>, vector<16x16xf32>,
    } else {
    }
    %c0 = arith.constant 0 : index
    %c0_1 = arith.constant 0 : index
    %3 = vector.load %arg5[%c0, %c0_1] : memref<16x16xf32, #tpu.memory_space<vmem>>, vector<16x16xf32>
    %c0_2 = arith.constant 0 : index
    %c0_3 = arith.constant 0 : index
    %4 = vector.load %arg6[%c0_2, %c0_3] : memref<16x16xf32, #tpu.memory_space<vmem>>, vector<16x16xf32>
    %c0_4 = arith.constant 0 : index
    %c0_5 = arith.constant 0 : index
    %5 = vector.load %arg7[%c0_4, %c0_5] : memref<16x16xf32, #tpu.memory_space<vmem>>, vector<16x16xf32>
    %c0_6 = arith.constant 0 : index
    %c0_7 = arith.constant 0 : index
    %6 = vector.load %arg11[%c0_6, %c0_7] : memref<1x16xf32, #tpu.memory_space<vmem>>, vector<1x16xf32>
    %c0_8 = arith.constant 0 : index
    %c0_9 = arith.constant 0 : index
    %7 = vector.load %arg12[%c0_8, %c0_9] : memref<1x16xf32, #tpu.memory_space<vmem>>, vector<1x16xf32>
    %c0_10 = arith.constant 0 : index
    %c0_11 = arith.constant 0 : index
    %8 = vector.load %arg13[%c0_10, %c0_11] : memref<1x16xf32, #tpu.memory_space<vmem>>, vector<1x16xf32>
    %c0_12 = arith.constant 0 : index
    %c0_13 = arith.constant 0 : index
    %9 = vector.load %arg14[%c0_12, %c0_13] : memref<16x16xf32, #tpu.memory_space<vmem>>, vector<16x16xf32>
    %c0_14 = arith.constant 0 : index
    %c0_15 = arith.constant 0 : index
    %10 = vector.load %arg15[%c0_14, %c0_15] : memref<16x16xf32, #tpu.memory_space<vmem>>, vector<16x16xf32>
    %c0_16 = arith.constant 0 : index
    %c0_17 = arith.constant 0 : index
    %11 = vector.load %arg16[%c0_16, %c0_17] : memref<1x16xf32, #tpu.memory_space<vmem>>, vector<1x16xf32>
    %c0_18 = arith.constant 0 : index
    %c0_19 = arith.constant 0 : index
    %12 = vector.load %arg17[%c0_18, %c0_19] : memref<1x16xf32, #tpu.memory_space<vmem>>, vector<1x16xf32>
    %c0_20 = arith.constant 0 : index
    %c0_21 = arith.constant 0 : index
    %c0_22 = arith.constant 0 : index
    %13 = vector.load %arg1[%c0_20, %c0_21, %c0_22] : memref<1x16x8xf32, #tpu.memory_space<vmem>>, vector<1x16x8xf32>
    %14 = vector.shape_cast %13 : vector<1x16x8xf32> to vector<16x8xf32>
    %c0_23 = arith.constant 0 : index
    %c0_24 = arith.constant 0 : index
    %15 = vector.load %arg2[%c0_23, %c0_24] : memref<8x16xf32, #tpu.memory_space<vmem>>, vector<8x16xf32>
    %cst = arith.constant dense<0.000000e+00> : vector<16x16xf32>
    %16 = tpu.matmul %14, %15, %cst {dimension_numbers = #tpu.dot_dimension_numbers<[1], [0], [0], [1], [0, 0, 1, 1], [], []>} : vector<16x8xf32>, vector<8x16xf32>, vector<16x16xf32> -> vector<16x16xf32>
    %c0_25 = arith.constant 0 : index
    %c0_26 = arith.constant 0 : index
    %17 = vector.load %arg8[%c0_25, %c0_26] : memref<1x16xf32, #tpu.memory_space<vmem>>, vector<1x16xf32>
    %18 = vector.broadcast %17 : vector<1x16xf32> to vector<16x16xf32>
    %19 = arith.addf %16, %18 : vector<16x16xf32>
    %c0_27 = arith.constant 0 : index
    %c0_28 = arith.constant 0 : index
    %20 = vector.load %arg19[%c0_27, %c0_28] : memref<16x16xf32, #tpu.memory_space<vmem>>, vector<16x16xf32>
    tpu.vector_store %arg19[%c0_27, %c0_28], %19 {strides = array<i32>} : memref<16x16xf32, #tpu.memory_space<vmem>>, vector<16x16xf32>,
    %c0_29 = arith.constant 0 : index
    %c0_30 = arith.constant 0 : index
    %21 = vector.load %arg3[%c0_29, %c0_30] : memref<8x16xf32, #tpu.memory_space<vmem>>, vector<8x16xf32>
    %cst_31 = arith.constant dense<0.000000e+00> : vector<16x16xf32>
    %22 = tpu.matmul %14, %21, %cst_31 {dimension_numbers = #tpu.dot_dimension_numbers<[1], [0], [0], [1], [0, 0, 1, 1], [], []>} : vector<16x8xf32>, vector<8x16xf32>, vector<16x16xf32> -> vector<16x16xf32>
    %c0_32 = arith.constant 0 : index
    %c0_33 = arith.constant 0 : index
    %23 = vector.load %arg9[%c0_32, %c0_33] : memref<1x16xf32, #tpu.memory_space<vmem>>, vector<1x16xf32>
    %24 = vector.broadcast %23 : vector<1x16xf32> to vector<16x16xf32>
    %25 = arith.addf %22, %24 : vector<16x16xf32>
    %c0_34 = arith.constant 0 : index
    %c0_35 = arith.constant 0 : index
    %26 = vector.load %arg20[%c0_34, %c0_35] : memref<16x16xf32, #tpu.memory_space<vmem>>, vector<16x16xf32>
    tpu.vector_store %arg20[%c0_34, %c0_35], %25 {strides = array<i32>} : memref<16x16xf32, #tpu.memory_space<vmem>>, vector<16x16xf32>,
    %c0_36 = arith.constant 0 : index
    %c0_37 = arith.constant 0 : index
    %27 = vector.load %arg4[%c0_36, %c0_37] : memref<8x16xf32, #tpu.memory_space<vmem>>, vector<8x16xf32>
    %cst_38 = arith.constant dense<0.000000e+00> : vector<16x16xf32>
    %28 = tpu.matmul %14, %27, %cst_38 {dimension_numbers = #tpu.dot_dimension_numbers<[1], [0], [0], [1], [0, 0, 1, 1], [], []>} : vector<16x8xf32>, vector<8x16xf32>, vector<16x16xf32> -> vector<16x16xf32>
    %c0_39 = arith.constant 0 : index
    %c0_40 = arith.constant 0 : index
    %29 = vector.load %arg10[%c0_39, %c0_40] : memref<1x16xf32, #tpu.memory_space<vmem>>, vector<1x16xf32>
    %30 = vector.broadcast %29 : vector<1x16xf32> to vector<16x16xf32>
    %31 = arith.addf %28, %30 : vector<16x16xf32>
    %c0_41 = arith.constant 0 : index
    %c0_42 = arith.constant 0 : index
    %32 = vector.load %arg21[%c0_41, %c0_42] : memref<16x16xf32, #tpu.memory_space<vmem>>, vector<16x16xf32>
    tpu.vector_store %arg21[%c0_41, %c0_42], %31 {strides = array<i32>} : memref<16x16xf32, #tpu.memory_space<vmem>>, vector<16x16xf32>,
    %cst_43 = arith.constant 0.000000e+00 : f32
    %33 = vector.broadcast %cst_43 : f32 to vector<1x16xf32>
    %c0_44 = arith.constant 0 : index
    %c0_45 = arith.constant 0 : index
    %34 = vector.load %arg23[%c0_44, %c0_45] : memref<1x16xf32, #tpu.memory_space<vmem>>, vector<1x16xf32>
    tpu.vector_store %arg23[%c0_44, %c0_45], %33 {strides = array<i32>} : memref<1x16xf32, #tpu.memory_space<vmem>>, vector<1x16xf32>,
    %c0_i32_46 = arith.constant 0 : i32
    %c16_i32 = arith.constant 16 : i32
    %35 = arith.addi %c0_i32_46, %c16_i32 : i32
    %c1_i32 = arith.constant 1 : i32
    scf.for %arg24 = %c0_i32_46 to %35 step %c1_i32  : i32 {
      %c0_61 = arith.constant 0 : index
      %c0_62 = arith.constant 0 : index
      %61 = vector.load %arg23[%c0_61, %c0_62] : memref<1x16xf32, #tpu.memory_space<vmem>>, vector<1x16xf32>
      %cst_63 = arith.constant dense<0.000000e+00> : vector<1x16xf32>
      %62 = tpu.matmul %61, %3, %cst_63 {dimension_numbers = #tpu.dot_dimension_numbers<[1], [0], [0], [1], [0, 0, 1, 1], [], []>} : vector<1x16xf32>, vector<16x16xf32>, vector<1x16xf32> -> vector<1x16xf32>
      %63 = arith.addf %62, %6 : vector<1x16xf32>
      %cst_64 = arith.constant dense<0.000000e+00> : vector<1x16xf32>
      %64 = tpu.matmul %61, %4, %cst_64 {dimension_numbers = #tpu.dot_dimension_numbers<[1], [0], [0], [1], [0, 0, 1, 1], [], []>} : vector<1x16xf32>, vector<16x16xf32>, vector<1x16xf32> -> vector<1x16xf32>
      %65 = arith.addf %64, %7 : vector<1x16xf32>
      %cst_65 = arith.constant dense<0.000000e+00> : vector<1x16xf32>
      %66 = tpu.matmul %61, %5, %cst_65 {dimension_numbers = #tpu.dot_dimension_numbers<[1], [0], [0], [1], [0, 0, 1, 1], [], []>} : vector<1x16xf32>, vector<16x16xf32>, vector<1x16xf32> -> vector<1x16xf32>
      %67 = arith.addf %66, %8 : vector<1x16xf32>
      %68 = arith.index_cast %arg24 : i32 to index
      %c0_66 = arith.constant 0 : index
      %69 = vector.load %arg19[%68, %c0_66] : memref<16x16xf32, #tpu.memory_space<vmem>>, vector<1x16xf32>
      %70 = arith.addf %69, %63 : vector<1x16xf32>
      %71 = arith.negf %70 : vector<1x16xf32>
      %72 = math.exp %71 : vector<1x16xf32>
      %cst_67 = arith.constant 1.000000e+00 : f32
      %73 = vector.broadcast %cst_67 : f32 to vector<1x16xf32>
      %74 = arith.addf %73, %72 : vector<1x16xf32>
      %75 = arith.divf %73, %74 : vector<1x16xf32>
      %76 = arith.index_cast %arg24 : i32 to index
      %c0_68 = arith.constant 0 : index
      %77 = vector.load %arg20[%76, %c0_68] : memref<16x16xf32, #tpu.memory_space<vmem>>, vector<1x16xf32>
      %78 = arith.addf %77, %65 : vector<1x16xf32>
      %79 = arith.negf %78 : vector<1x16xf32>
      %80 = math.exp %79 : vector<1x16xf32>
      %cst_69 = arith.constant 1.000000e+00 : f32
      %81 = vector.broadcast %cst_69 : f32 to vector<1x16xf32>
      %82 = arith.addf %81, %80 : vector<1x16xf32>
      %83 = arith.divf %81, %82 : vector<1x16xf32>
      %84 = arith.index_cast %arg24 : i32 to index
      %c0_70 = arith.constant 0 : index
      %85 = vector.load %arg21[%84, %c0_70] : memref<16x16xf32, #tpu.memory_space<vmem>>, vector<1x16xf32>
      %86 = arith.mulf %75, %67 : vector<1x16xf32>
      %87 = arith.addf %85, %86 : vector<1x16xf32>
      %88 = math.tanh %87 : vector<1x16xf32>
      %cst_71 = arith.constant 1.000000e+00 : f32
      %89 = vector.broadcast %cst_71 : f32 to vector<1x16xf32>
      %90 = arith.subf %89, %83 : vector<1x16xf32>
      %91 = arith.mulf %90, %88 : vector<1x16xf32>
      %92 = arith.mulf %83, %61 : vector<1x16xf32>
      %93 = arith.addf %91, %92 : vector<1x16xf32>
      %c0_72 = arith.constant 0 : index
      %c0_73 = arith.constant 0 : index
      %94 = vector.load %arg23[%c0_72, %c0_73] : memref<1x16xf32, #tpu.memory_space<vmem>>, vector<1x16xf32>
      tpu.vector_store %arg23[%c0_72, %c0_73], %93 {strides = array<i32>} : memref<1x16xf32, #tpu.memory_space<vmem>>, vector<1x16xf32>,
      %95 = arith.index_cast %arg24 : i32 to index
      %c0_74 = arith.constant 0 : index
      %96 = vector.load %arg22[%95, %c0_74] : memref<16x16xf32, #tpu.memory_space<vmem>>, vector<1x16xf32>
      tpu.vector_store %arg22[%95, %c0_74], %93 {strides = array<i32>} : memref<16x16xf32, #tpu.memory_space<vmem>>, vector<1x16xf32>,
    }
    %c16_i32_47 = arith.constant 16 : i32
    %c0_48 = arith.constant 0 : index
    %c0_49 = arith.constant 0 : index
    %36 = vector.load %arg22[%c0_48, %c0_49] : memref<16x16xf32, #tpu.memory_space<vmem>>, vector<16x16xf32>
    %37 = tpu.transpose %36, [1, 0] : vector<16x16xf32> -> vector<16x16xf32>
    %cst_50 = arith.constant dense<0.000000e+00> : vector<16x16xf32>
    %38 = tpu.matmul %37, %9, %cst_50 {dimension_numbers = #tpu.dot_dimension_numbers<[1], [0], [0], [1], [0, 0, 1, 1], [], []>} : vector<16x16xf32>, vector<16x16xf32>, vector<16x16xf32> -> vector<16x16xf32>
    %39 = vector.broadcast %11 : vector<1x16xf32> to vector<16x16xf32>
    %40 = arith.addf %38, %39 : vector<16x16xf32>
    %cst_51 = arith.constant dense<0.000000e+00> : vector<16x16xf32>
    %41 = tpu.matmul %37, %10, %cst_51 {dimension_numbers = #tpu.dot_dimension_numbers<[1], [0], [0], [1], [0, 0, 1, 1], [], []>} : vector<16x16xf32>, vector<16x16xf32>, vector<16x16xf32> -> vector<16x16xf32>
    %42 = vector.broadcast %12 : vector<1x16xf32> to vector<16x16xf32>
    %43 = arith.addf %41, %42 : vector<16x16xf32>
    %cst_52 = arith.constant dense<0.000000e+00> : vector<16x16xf32>
    %44 = tpu.matmul %43, %40, %cst_52 {dimension_numbers = #tpu.dot_dimension_numbers<[1], [1], [0], [0], [0, 0, 1, 0], [], []>} : vector<16x16xf32>, vector<16x16xf32>, vector<16x16xf32> -> vector<16x16xf32>
    %cst_53 = arith.constant dense<0xFF800000> : vector<16xf32>
    %45 = vector.multi_reduction <maximumf>, %44, %cst_53 [1] : vector<16x16xf32> to vector<16xf32>
    %46 = vector.shape_cast %45 : vector<16xf32> to vector<16x1xf32>
    %47 = vector.broadcast %46 : vector<16x1xf32> to vector<16x16xf32>
    %48 = arith.subf %44, %47 : vector<16x16xf32>
    %49 = math.exp %48 : vector<16x16xf32>
    %cst_54 = arith.constant dense<0.000000e+00> : vector<16xf32>
    %50 = vector.multi_reduction <add>, %49, %cst_54 [1] : vector<16x16xf32> to vector<16xf32>
    %51 = vector.shape_cast %50 : vector<16xf32> to vector<16x1xf32>
    %52 = tpu.reciprocal %51 : vector<16x1xf32> -> vector<16x1xf32>
    %53 = vector.broadcast %52 : vector<16x1xf32> to vector<16x16xf32>
    %54 = arith.mulf %49, %53 : vector<16x16xf32>
    %c0_55 = arith.constant 0 : index
    %c0_56 = arith.constant 0 : index
    %55 = vector.load %arg18[%c0_55, %c0_56] : memref<16x16xf32, #tpu.memory_space<vmem>>, vector<16x16xf32>
    %56 = arith.addf %55, %54 : vector<16x16xf32>
    %c0_57 = arith.constant 0 : index
    %c0_58 = arith.constant 0 : index
    %57 = vector.load %arg18[%c0_57, %c0_58] : memref<16x16xf32, #tpu.memory_space<vmem>>, vector<16x16xf32>
    tpu.vector_store %arg18[%c0_57, %c0_58], %56 {strides = array<i32>} : memref<16x16xf32, #tpu.memory_space<vmem>>, vector<16x16xf32>,
    %c1_i32_59 = arith.constant 1 : i32
    %58 = arith.cmpi eq, %arg0, %c1_i32_59 : i32
    %59 = arith.extui %58 : i1 to i32
    %c0_i32_60 = arith.constant 0 : i32
    %60 = arith.cmpi ne, %59, %c0_i32_60 : i32
    scf.if %60 {
      %c0_61 = arith.constant 0 : index
      %c0_62 = arith.constant 0 : index
      %61 = vector.load %arg18[%c0_61, %c0_62] : memref<16x16xf32, #tpu.memory_space<vmem>>, vector<16x16xf32>
      %cst_63 = arith.constant 5.000000e-01 : f32
      %62 = vector.broadcast %cst_63 : f32 to vector<16x16xf32>
      %63 = arith.mulf %61, %62 : vector<16x16xf32>
      %c0_64 = arith.constant 0 : index
      %c0_65 = arith.constant 0 : index
      %64 = vector.load %arg18[%c0_64, %c0_65] : memref<16x16xf32, #tpu.memory_space<vmem>>, vector<16x16xf32>
      tpu.vector_store %arg18[%c0_64, %c0_65], %63 {strides = array<i32>} : memref<16x16xf32, #tpu.memory_space<vmem>>, vector<16x16xf32>,
    } else {
    }
    return
  }
  func.func @transform_0(%arg0: i32) -> (i32, i32, i32) {
    %c0_i32 = arith.constant 0 : i32
    %c0_i32_0 = arith.constant 0 : i32
    %c0_i32_1 = arith.constant 0 : i32
    return %arg0, %c0_i32, %c0_i32_0 : i32, i32, i32
  }
  func.func @transform_1(%arg0: i32) -> (i32, i32) {
    %c0_i32 = arith.constant 0 : i32
    %c0_i32_0 = arith.constant 0 : i32
    %c0_i32_1 = arith.constant 0 : i32
    return %c0_i32, %c0_i32_0 : i32, i32
  }
  func.func @transform_2(%arg0: i32) -> (i32, i32) {
    %c0_i32 = arith.constant 0 : i32
    %c0_i32_0 = arith.constant 0 : i32
    %c0_i32_1 = arith.constant 0 : i32
    return %c0_i32, %c0_i32_0 : i32, i32
  }
  func.func @transform_3(%arg0: i32) -> (i32, i32) {
    %c0_i32 = arith.constant 0 : i32
    %c0_i32_0 = arith.constant 0 : i32
    %c0_i32_1 = arith.constant 0 : i32
    return %c0_i32, %c0_i32_0 : i32, i32
  }
  func.func @transform_4(%arg0: i32) -> (i32, i32) {
    %c0_i32 = arith.constant 0 : i32
    %c0_i32_0 = arith.constant 0 : i32
    %c0_i32_1 = arith.constant 0 : i32
    return %c0_i32, %c0_i32_0 : i32, i32
  }
  func.func @transform_5(%arg0: i32) -> (i32, i32) {
    %c0_i32 = arith.constant 0 : i32
    %c0_i32_0 = arith.constant 0 : i32
    %c0_i32_1 = arith.constant 0 : i32
    return %c0_i32, %c0_i32_0 : i32, i32
  }
  func.func @transform_6(%arg0: i32) -> (i32, i32) {
    %c0_i32 = arith.constant 0 : i32
    %c0_i32_0 = arith.constant 0 : i32
    %c0_i32_1 = arith.constant 0 : i32
    return %c0_i32, %c0_i32_0 : i32, i32
  }
  func.func @transform_7(%arg0: i32) -> (i32, i32) {
    %c0_i32 = arith.constant 0 : i32
    %c0_i32_0 = arith.constant 0 : i32
    %c0_i32_1 = arith.constant 0 : i32
    return %c0_i32, %c0_i32_0 : i32, i32
  }
  func.func @transform_8(%arg0: i32) -> (i32, i32) {
    %c0_i32 = arith.constant 0 : i32
    %c0_i32_0 = arith.constant 0 : i32
    %c0_i32_1 = arith.constant 0 : i32
    return %c0_i32, %c0_i32_0 : i32, i32
  }
  func.func @transform_9(%arg0: i32) -> (i32, i32) {
    %c0_i32 = arith.constant 0 : i32
    %c0_i32_0 = arith.constant 0 : i32
    %c0_i32_1 = arith.constant 0 : i32
    return %c0_i32, %c0_i32_0 : i32, i32
  }
  func.func @transform_10(%arg0: i32) -> (i32, i32) {
    %c0_i32 = arith.constant 0 : i32
    %c0_i32_0 = arith.constant 0 : i32
    %c0_i32_1 = arith.constant 0 : i32
    return %c0_i32, %c0_i32_0 : i32, i32
  }
  func.func @transform_11(%arg0: i32) -> (i32, i32) {
    %c0_i32 = arith.constant 0 : i32
    %c0_i32_0 = arith.constant 0 : i32
    %c0_i32_1 = arith.constant 0 : i32
    return %c0_i32, %c0_i32_0 : i32, i32
  }
  func.func @transform_12(%arg0: i32) -> (i32, i32) {
    %c0_i32 = arith.constant 0 : i32
    %c0_i32_0 = arith.constant 0 : i32
    %c0_i32_1 = arith.constant 0 : i32
    return %c0_i32, %c0_i32_0 : i32, i32
  }
  func.func @transform_13(%arg0: i32) -> (i32, i32) {
    %c0_i32 = arith.constant 0 : i32
    %c0_i32_0 = arith.constant 0 : i32
    %c0_i32_1 = arith.constant 0 : i32
    return %c0_i32, %c0_i32_0 : i32, i32
  }
  func.func @transform_14(%arg0: i32) -> (i32, i32) {
    %c0_i32 = arith.constant 0 : i32
    %c0_i32_0 = arith.constant 0 : i32
    %c0_i32_1 = arith.constant 0 : i32
    return %c0_i32, %c0_i32_0 : i32, i32
  }
  func.func @transform_15(%arg0: i32) -> (i32, i32) {
    %c0_i32 = arith.constant 0 : i32
    %c0_i32_0 = arith.constant 0 : i32
    %c0_i32_1 = arith.constant 0 : i32
    return %c0_i32, %c0_i32_0 : i32, i32
  }
  func.func @transform_16(%arg0: i32) -> (i32, i32) {
    %c0_i32 = arith.constant 0 : i32
    %c0_i32_0 = arith.constant 0 : i32
    %c0_i32_1 = arith.constant 0 : i32
    return %c0_i32, %c0_i32_0 : i32, i32
  }
  func.func @transform_17(%arg0: i32) -> (i32, i32) {
    %c0_i32 = arith.constant 0 : i32
    %c0_i32_0 = arith.constant 0 : i32
    %c0_i32_1 = arith.constant 0 : i32
    return %c0_i32, %c0_i32_0 : i32, i32
  }
}

</mosaic_0001>

<bundles_post_ra>
// kernel: tpu_custom_call.1
= control target key start
LH: loop header
LB: loop body
LE: loop exit
PB: predicated region body
PF: predicated region fallthrough
CT: control target
= control target key end

     0   :  { %s2507_s0 = inlined_call_operand.vmem [shape: f32[2,16,8], index: 0, kind: input, shape index: {}]   ;;  %s2508_s1 = inlined_call_operand.hbm [shape: f32[8,16], index: 1, kind: input, shape index: {}]   ;;  %s2509_s2 = inlined_call_operand.hbm [shape: f32[8,16], index: 2, kind: input, shape index: {}]   ;;  %s2510_s3 = inlined_call_operand.hbm [shape: f32[8,16], index: 3, kind: input, shape index: {}]   ;;  %s2511_s4 = inlined_call_operand.vmem [shape: f32[16,16], index: 4, kind: input, shape index: {}]   ;;  %s2512_s5 = inlined_call_operand.vmem [shape: f32[16,16], index: 5, kind: input, shape index: {}]   ;;  %s2513_s6 = inlined_call_operand.vmem [shape: f32[16,16], index: 6, kind: input, shape index: {}]   ;;  %s2514_s7 = inlined_call_operand.hbm [shape: f32[1,16], index: 7, kind: input, shape index: {}]   ;;  %s2515_s8 = inlined_call_operand.hbm [shape: f32[1,16], index: 8, kind: input, shape index: {}]   ;;  %s2516_s9 = inlined_call_operand.hbm [shape: f32[1,16], index: 9, kind: input, shape index: {}]   ;;  %s2517_s10 = inlined_call_operand.vmem [shape: f32[1,16], index: 10, kind: input, shape index: {}]   ;;  %s2518_s11 = inlined_call_operand.vmem [shape: f32[1,16], index: 11, kind: input, shape index: {}]   ;;  %s2519_s12 = inlined_call_operand.vmem [shape: f32[1,16], index: 12, kind: input, shape index: {}]   ;;  %s2520_s13 = inlined_call_operand.vmem [shape: f32[16,16], index: 13, kind: input, shape index: {}]   ;;  %s2521_s14 = inlined_call_operand.hbm [shape: f32[16,16], index: 14, kind: input, shape index: {}]   ;;  %s2522_s15 = inlined_call_operand.vmem [shape: f32[1,16], index: 15, kind: input, shape index: {}]   ;;  %s2523_s16 = inlined_call_operand.vmem [shape: f32[1,16], index: 16, kind: input, shape index: {}]   ;;  %s2524_s17 = inlined_call_operand.hbm [shape: f32[16,16], index: 17, kind: output, shape index: {}]  }
   0x1   :  { %2526 = sst [smem:[#allocation25_spill]] %s2507_s0 }
   0x2   :  { %2527 = sst [smem:[#allocation26_spill]] %s2508_s1 }
   0x3   :  { %22 = vsyncpa [#allocation8], 0 }
   0x4   :  { %23 = vsyncpa [#allocation11], 0 }
   0x5   :  { %24 = vsyncpa [#allocation14], 0 }
   0x6   :  { %25 = vsyncpa [#allocation17], 0 }
   0x7   :  { %26 = vsyncpa [#allocation9], 0  ;;  %s2223_s24 = smov 0  }
   0x8 LB: > { %s2117_s25 = smov [#allocation10]   ;;  %s2229_s27 = sadd.s32 4294967295, %s2111_s24   ;;  %s2111_s24 = sphi %s2223_s24, %s32_s24  }
   0x9   : > { %s444_s26 = sshll.u32 %s2117_s25, 4  ;;  %p1618_p0 = scmp.ge.s32.totalorder %s2111_s24, 1  ;;  %s445_s26 = int_to_ptr.vmem [resolvable:$true] %s444_s26 }
   0xa   : > { %p420_p1 = scmp.lt.s32.totalorder %s2111_s24, 3  ;;  %p2525_p3 = scmp.eq.s32.totalorder %s2229_s27, 0 }
   0xb   : > { %s2118_s29 = smov [#allocation13]   ;;  %s2119_s30 = smov [#allocation16]  }
   0xc   : > { %p2235_p4 = pnand %p1618_p0, %p420_p1  ;;  %s475_s0 = sshll.u32 %s2118_s29, 4  ;;  %s2241_s0 = int_to_ptr.vmem [resolvable:$true] %s475_s0 }
   0xd   : > { %s497_s18 = sshll.u32 %s2119_s30, 4  ;;  %s2120_s1 = smov [#allocation7]   ;;  %s2249_s18 = int_to_ptr.vmem [resolvable:$true] %s497_s18 }
   0xe   : > { %p1787_p5 = pneg %p2235_p4  ;;  %s433_s20 = sshll.u32 %s2120_s1, 4  ;;  %s2251_s20 = int_to_ptr.vmem [resolvable:$true] %s433_s20 }
   0xf   : > { %s1886_s22 = scalar_lea.vmem %s445_s26, 128  ;;  %p1894_p11 = scmp.lt.s32.totalorder %s445_s26, %s445_s26 }
  0x10   : > { %p2245_p6 = pnand %p2525_p3, %p1787_p5  ;;  %p1887_p8 = scmp.ne.s32.totalorder %s445_s26, %s1886_s22 }
  0x11   : > { %p1895_p12 = scmp.lt.s32.totalorder %s1886_s22, %s1886_s22 }
  0x12   : > { %p2255_p7 = pneg %p2245_p6 }
  0x13   : > { %p1896_p13 = por %p1895_p12, %p1894_p11 }
  0x14   : > { %p1889_p9 = pnand %p1887_p8, %p2255_p7 }
  0x16   : > { %p1890_p10 = pneg %p1889_p9 }
  0x18   : > { %p1897_p0 = pnand %p1896_p13, %p1890_p10 }
  0x1a   : > { %1900 = shalt.err (!%p1897_p0)
}
  0x1b   : > { %1793 = dma.hbm_to_vmem [thread:$0]  (!%p2245_p6), %s2509_s2, 128, %s445_s26, [#allocation11]  }
  0x1c   : > { %s1912_s29 = scalar_lea.vmem %s2241_s0, 16  ;;  %s1919_s30 = scalar_lea.vmem %s2241_s0, 32 }
  0x1d   : > { %p1913_p1 = scmp.ne.s32.totalorder %s2241_s0, %s1912_s29  ;;  %p1920_p9 = scmp.lt.s32.totalorder %s2241_s0, %s2241_s0 }
  0x1e   : > { %p1921_p10 = scmp.lt.s32.totalorder %s1919_s30, %s1912_s29 }
  0x1f   : > { %p1915_p5 = pnand %p1913_p1, %p2255_p7 }
  0x20   : > { %p1922_p11 = por %p1921_p10, %p1920_p9 }
  0x21   : > { %p1916_p8 = pneg %p1915_p5 }
  0x23   : > { %p1923_p12 = pnand %p1922_p11, %p1916_p8 }
  0x25   : > { %1926 = shalt.err (!%p1923_p12)
}
  0x26   : > { %1799 = dma.hbm_to_vmem [thread:$0]  (!%p2245_p6), %s2514_s7, 16, %s2241_s0, [#allocation14]  }
  0x27   : > { %s1938_s26 = scalar_lea.vmem %s2249_s18, 16  ;;  %s1945_s23 = scalar_lea.vmem %s2249_s18, 32 }
  0x28   : > { %p1939_p13 = scmp.ne.s32.totalorder %s2249_s18, %s1938_s26  ;;  %p1946_p5 = scmp.lt.s32.totalorder %s2249_s18, %s2249_s18 }
  0x29   : > { %p1947_p8 = scmp.lt.s32.totalorder %s1945_s23, %s1938_s26 }
  0x2a   : > { %p1941_p0 = pnand %p1939_p13, %p2255_p7 }
  0x2b   : > { %p1948_p9 = por %p1947_p8, %p1946_p5 }
  0x2c   : > { %p1942_p1 = pneg %p1941_p0 }
  0x2e   : > { %p1949_p10 = pnand %p1948_p9, %p1942_p1 }
  0x30   : > { %1952 = shalt.err (!%p1949_p10)
}
  0x31   : > { %1805 = dma.hbm_to_vmem [thread:$0]  (!%p2245_p6), %s2516_s9, 16, %s2249_s18, [#allocation17]  }
  0x32   : > { %s1964_s0 = scalar_lea.vmem %s2251_s20, 128  ;;  %p1972_p0 = scmp.lt.s32.totalorder %s2251_s20, %s2251_s20 }
  0x33   : > { %p1965_p11 = scmp.ne.s32.totalorder %s2251_s20, %s1964_s0  ;;  %p1973_p1 = scmp.lt.s32.totalorder %s1964_s0, %s1964_s0 }
  0x35   : > { %p1967_p12 = pnand %p1965_p11, %p2255_p7  ;;  %p1974_p5 = por %p1973_p1, %p1972_p0 }
  0x37   : > { %p1968_p13 = pneg %p1967_p12 }
  0x39   : > { %p1975_p8 = pnand %p1974_p5, %p1968_p13 }
  0x3b   : > { %1978 = shalt.err (!%p1975_p8)
}
  0x3c   : > { %s2531_s22 = sld [smem:[#allocation26_spill]]  ;;  %s2121_s18 = smov [#allocation12]  }
  0x3d   : > { %s455_s26 = sshll.u32 %s2121_s18, 4  ;;  %s2122_s23 = smov [#allocation15]   ;;  %s456_s26 = int_to_ptr.vmem [resolvable:$true] %s455_s26 }
  0x3e   : > { %s486_s25 = sshll.u32 %s2122_s23, 4  ;;  %s1990_s29 = scalar_lea.vmem %s456_s26, 128  ;;  %s487_s25 = int_to_ptr.vmem [resolvable:$true] %s486_s25 }
  0x3f   : > { %p1991_p9 = scmp.ne.s32.totalorder %s456_s26, %s1990_s29  ;;  %p1998_p12 = scmp.lt.s32.totalorder %s456_s26, %s456_s26 }
  0x40   : > { %p1999_p13 = scmp.lt.s32.totalorder %s1990_s29, %s1990_s29 }
  0x41   : > { %p1993_p10 = pnand %p1991_p9, %p2255_p7 }
  0x42   : > { %1790 = dma.hbm_to_vmem [thread:$0]  (!%p2245_p6), %s2531_s22, 128, %s2251_s20, [#allocation8]  }
  0x43   : > { %p1994_p11 = pneg %p1993_p10  ;;  %p2000_p0 = por %p1999_p13, %p1998_p12 }
  0x45   : > { %p2001_p1 = pnand %p2000_p0, %p1994_p11 }
  0x47   : > { %2004 = shalt.err (!%p2001_p1)
}
  0x48   : > { %1796 = dma.hbm_to_vmem [thread:$0]  (!%p2245_p6), %s2510_s3, 128, %s456_s26, [#allocation11]  }
  0x49   : > { %s2016_s20 = scalar_lea.vmem %s487_s25, 16  ;;  %s2023_s1 = scalar_lea.vmem %s487_s25, 32 }
  0x4a   : > { %p2017_p5 = scmp.ne.s32.totalorder %s487_s25, %s2016_s20  ;;  %p2024_p9 = scmp.lt.s32.totalorder %s487_s25, %s487_s25 }
  0x4b   : > { %p2025_p10 = scmp.lt.s32.totalorder %s2023_s1, %s2016_s20 }
  0x4c   : > { %p2019_p8 = pnand %p2017_p5, %p2255_p7 }
  0x4d   : > { %p2026_p3 = por %p2025_p10, %p2024_p9 }
  0x4e   : > { %p2020_p2 = pneg %p2019_p8 }
  0x50   : > { %p2027_p12 = pnand %p2026_p3, %p2020_p2 }
  0x52   : > { %2030 = shalt.err (!%p2027_p12)
}
  0x53   : > { %1802 = dma.hbm_to_vmem [thread:$0]  (!%p2245_p6), %s2515_s8, 16, %s487_s25, [#allocation14]  }
  0x54   : > { %s2123_s26 = smov [#allocation18]  }
  0x55   : > { %s519_s23 = sshll.u32 %s2123_s26, 4  ;;  %s520_s23 = int_to_ptr.vmem [resolvable:$true] %s519_s23 }
  0x56   : > { %s2042_s29 = scalar_lea.vmem %s520_s23, 256  ;;  %p2050_p1 = scmp.lt.s32.totalorder %s520_s23, %s520_s23 }
  0x57   : > { %p2043_p11 = scmp.ne.s32.totalorder %s520_s23, %s2042_s29  ;;  %p2051_p5 = scmp.lt.s32.totalorder %s2042_s29, %s2042_s29 }
  0x59   : > { %p2045_p13 = pnand %p2043_p11, %p2255_p7  ;;  %p2052_p8 = por %p2051_p5, %p2050_p1 }
  0x5b   : > { %p2046_p0 = pneg %p2045_p13 }
  0x5d   : > { %p2053_p2 = pnand %p2052_p8, %p2046_p0 }
  0x5f   : > { %2056 = shalt.err (!%p2053_p2)
}
  0x60   : > { %s2124_s0 = smov 128   ;;  %s2125_s30 = smov 8  }
  0x61   : > { %1808 = dma.hbm_to_vmem [thread:$0]  (!%p2245_p6), %s2521_s14, 256, %s520_s23, [#allocation17], %s2124_s0, %s2124_s0, %s2125_s30  }
  0x62   : > { %549 = sbr.rel (%p2235_p4) target bundleno = 1473 (0x5c1), region = 88  ;;  %p2532_p3 = scmp.eq.s32.totalorder (!%p2235_p4), %s2229_s27, 0 }
  0x67   : > { %2090 = dma.done.wait (%p2532_p3), [#allocation8], 128   ;;  %p2533_p7 = pmov %p2532_p3 }
  0x68   : > { %p2534_p9 = pmov %p2532_p3 }
  0x69   : > { %2092 = vsyncadd (%p2533_p7), [#allocation8], 4294967168 }
  0x6a   : > { %2094 = dma.done.wait (%p2534_p9), [#allocation11], 256   ;;  %p2535_p10 = pmov %p2532_p3 }
  0x6b   : > { %p2536_p12 = pmov %p2532_p3 }
  0x6c   : > { %2096 = vsyncadd (%p2535_p10), [#allocation11], 4294967040 }
  0x6d   : > { %2098 = dma.done.wait (%p2536_p12), [#allocation14], 32   ;;  %p2537_p6 = pmov %p2532_p3 }
  0x6e   : > { %p2538_p4 = pmov %p2532_p3 }
  0x6f   : > { %2100 = vsyncadd (%p2537_p6), [#allocation14], 4294967264 }
  0x70   : > { %2102 = dma.done.wait (%p2538_p4), [#allocation17], 272   ;;  %p2539_p11 = pmov %p2532_p3 }
  0x71   : > { %p620_p13 = scmp.lt.s32.totalorder %s2229_s27, 1  ;;  %s2540_s22 = sld [smem:[#allocation25_spill]] }
  0x72   : > { %2104 = vsyncadd (%p2539_p11), [#allocation17], 4294967024  ;;  %p2541_p0 = scmp.ne.s32.totalorder %s2229_s27, 0 }
  0x73   : > { %s621_s28 = scalar_select %p620_p13, %s2229_s27, 1 }
  0x74   : > { %628 = sbr.rel (%p2541_p0) target bundleno = 123 (0x7b), region = 120 }
  0x75   : > { %s1667_s19 = sshll.u32 %s621_s28, 4 }
  0x77   : > { %s624_s18 = scalar_lea.vmem %s2540_s22, %s1667_s19 }
  0x79   : > { %vm629_vm0 = vcmask 130048   ;;  %v2126_v0 = vmov 0.0  }
  0x7a   : > { %630 = vst.msk [vmem:[#allocation19] sm:$0xff] %vm629_vm0, %v2126_v0  ;;  %631 = vst.msk [vmem:[#allocation19 + $0x8] sm:$0xff] %vm629_vm0, %v2126_v0 }
  0x7b PF: > { %v2353_v1 = vld [vmem:[%s2511_s4] sm:$0xff]  ;;  %v2358_v2 = vld [vmem:[%s2511_s4 + $0x8] sm:$0xff]  ;;  %vm657_vm1 = vcmask 64512   ;;  %v827_v19 = vld [vmem:[#allocation12] sm:$0xff]  ;;  %vm912_vm2 = vcmask 122880   ;;  %v2127_v21 = vmov 0.0  }
  0x7c   : > { %v2363_v3 = vld [vmem:[%s2512_s5] sm:$0xff]  ;;  %v2368_v4 = vld [vmem:[%s2512_s5 + $0x8] sm:$0xff]  ;;  %913 = vst.msk [vmem:[#allocation6] sm:$0x1] %vm912_vm2, %v2127_v21  ;;  %v1638_v22 = vld [vmem:[#allocation13] ss:$0 sm:$0xff] }
  0x7d   : > { %v2373_v5 = vld [vmem:[%s2513_s6] sm:$0xff]  ;;  %v2378_v6 = vld [vmem:[%s2513_s6 + $0x8] sm:$0xff]  ;;  %vm739_vm3 = vcmask 130048   ;;  %v1641_v25 = vld [vmem:[#allocation15] ss:$0 sm:$0xff] }
  0x7e   : > { %v2383_v7 = vld [vmem:[%s2517_s10] sm:$0x1]  ;;  %v2403_v11 = vld [vmem:[%s2520_s13 + $0x8] sm:$0xff]  ;;  %v1644_v27 = vld [vmem:[#allocation16] ss:$0 sm:$0xff] }
  0x7f   : > { %v2388_v8 = vld [vmem:[%s2518_s11] sm:$0x1]  ;;  %v2407_v13 = vld [vmem:[#allocation18 + $0x8] sm:$0xff] }
  0x80   : > { %v2393_v9 = vld [vmem:[%s2519_s12] sm:$0x1]  ;;  %v649_v16 = vld [vmem:[#allocation7] sm:$0xff]  ;;  %v742_v20 = vld [vmem:[#allocation10] sm:$0xff] }
  0x81   : > { %v2398_v10 = vld [vmem:[%s2520_s13] sm:$0xff]  ;;  %v648_v18 = vld [vmem:[%s624_s18 + $0x8] sm:$0xff]  ;;  %1698 = vmatprep.subr.mxu0 %v649_v16  ;;  %1703 = vmatprep.subr.mxu1 %v742_v20 }
  0x82   : > { %v2405_v12 = vld [vmem:[#allocation18] sm:$0xff]  ;;  %1699 = vmatpush3.msra.mxu0 %v649_v16  ;;  %1704 = vmatpush3.msra.mxu1 %v742_v20 }
  0x83   : > { %v2412_v14 = vld [vmem:[%s2522_s15] ss:$0 sm:$0xff]  ;;  %1708 = vmatprep.subr.mxu0 %v827_v19 }
  0x84   : > { %v2417_v15 = vld [vmem:[%s2523_s16] ss:$0 sm:$0xff] }
  0x85   : > { %v647_v17 = vld [vmem:[%s624_s18] sm:$0xff]  ;;  %s2432_s18 = smov 0  }
  0x86   : > { %1700 = vmatprep.mubr.msk.f32.mxu0 %vm657_vm1, %v647_v17  ;;  %1705 = vmatprep.mubr.msk.f32.mxu1 %vm657_vm1, %v647_v17 }
  0x87   : > { %1701 = vmatmul.mubr.msk.f32.vlgmr.msra.gmra.mxu0 %vm657_vm1, %v648_v18  ;;  %1706 = vmatmul.mubr.msk.f32.vlgmr.msra.gmra.mxu1 %vm657_vm1, %v648_v18 }
  0x88   : > { %1709 = vmatpush3.msra.mxu0 %v827_v19  ;;  %1710 = vmatprep.mubr.msk.f32.mxu0 %vm657_vm1, %v647_v17 }
  0x8b   : > { %1711 = vmatmul.mubr.msk.f32.vlgmr.msra.gmra.mxu0 %vm657_vm1, %v648_v18 }
 0x147   : > { %v1702_v23 = vpop.f32.mrf.mxu0  ;;  %v1707_v29 = vpop.f32.mrf.mxu1 }
 0x148   : > { %v736_v24 = vadd.f32 %v1702_v23, %v1638_v22  ;;  %v822_v30 = vadd.f32 %v1707_v29, %v1641_v25 }
 0x149   : > { %v730_v26 = vpop.f32.mrf.mxu0  ;;  %v816_v33 = vpop.f32.mrf.mxu1 }
 0x14a   : > { %741 = vst.msk [vmem:[#allocation2 + $0x8] sm:$0xff] %vm739_vm3, %v736_v24  ;;  %v731_v28 = vadd.f32 %v1638_v22, %v730_v26  ;;  %826 = vst.msk [vmem:[#allocation3 + $0x8] sm:$0xff] %vm739_vm3, %v822_v30  ;;  %v817_v34 = vadd.f32 %v1641_v25, %v816_v33 }
 0x14b   : > { %v1712_v31 = vpop.f32.mrf.mxu0 }
 0x14c   : > { %740 = vst.msk [vmem:[#allocation2] sm:$0xff] %vm739_vm3, %v731_v28  ;;  %v907_v32 = vadd.f32 %v1712_v31, %v1644_v27  ;;  %825 = vst.msk [vmem:[#allocation3] sm:$0xff] %vm739_vm3, %v817_v34 }
 0x14d   : > { %v901_v35 = vpop.f32.mrf.mxu0 }
 0x14e   : > { %911 = vst.msk [vmem:[#allocation4 + $0x8] sm:$0xff] %vm739_vm3, %v907_v32  ;;  %v902_v36 = vadd.f32 %v1644_v27, %v901_v35 }
 0x150   : > { %910 = vst.msk [vmem:[#allocation4] sm:$0xff] %vm739_vm3, %v902_v36 }
 0x151 LB: >> { %v2128_v37 = vmov 0.0   ;;  %vm2129_vm4 = vmmov 0   ;;  %v920_v38 = vld [vmem:[#allocation6] sm:$0x1]  ;;  %s1134_s29 = scalar_lea.vmem [#allocation2], %s2115_s18  ;;  %s1143_s0 = scalar_lea.vmem [#allocation3], %s2115_s18  ;;  %s2115_s18 = sphi %s2432_s18, %s919_s18  }
 0x152   : >> { %1713 = vmatprep.subr.mxu0 %v2128_v37  ;;  %1717 = vmatprep.mubr.msk.f32.mxu0 %vm2129_vm4, %v2128_v37  ;;  %s1152_s30 = scalar_lea.vmem [#allocation4], %s2115_s18  ;;  %s1162_s20 = scalar_lea.vmem [#allocation5], %s2115_s18 }
 0x153   : >> { %1714 = vmatpush3.msra.mxu0 %v2358_v2  ;;  %1720 = vmatprep.subr.mxu1 %v2128_v37  ;;  %v1135_v40 = vld [vmem:[%s1134_s29] sm:$0x1]  ;;  %s919_s18 = sadd.s32 1, %s2115_s18  }
 0x154   : >> { %1715 = vmatprep.subr.mxu0 %v2128_v37  ;;  %1721 = vmatpush3.msra.mxu1 %v2368_v4  ;;  %v1144_v46 = vld [vmem:[%s1143_s0] sm:$0x1]  ;;  %p916_p1 = scmp.ge.s32.totalorder %s919_s18, 16  }
 0x155   : >> { %1716 = vmatpush3.msra.mxu0 %v2353_v1  ;;  %1722 = vmatprep.subr.mxu1 %v2128_v37  ;;  %v1475_v33 = vld [vmem:[#allocation19] sm:$0xff] (%p916_p1)  ;;  %p1662_p5 = scmp.ne.s32.totalorder (%p916_p1), %s2229_s27, 1 }
 0x156   : >> { %1718 = vmatmul.mubr.msk.f32.vlgmr.msra.gmra.mxu0 %vm739_vm3, %v920_v38  ;;  %1723 = vmatpush3.msra.mxu1 %v2363_v3 }
 0x157   : >> { %1724 = vmatprep.mubr.msk.f32.mxu1 %vm2129_vm4, %v2128_v37  ;;  %1727 = vmatprep.subr.mxu0 %v2128_v37  ;;  %v1153_v59 = vld [vmem:[%s1152_s30] sm:$0x1] }
 0x158   : >> { %1725 = vmatmul.mubr.msk.f32.vlgmr.msra.gmra.mxu1 %vm739_vm3, %v920_v38  ;;  %1728 = vmatpush3.msra.mxu0 %v2378_v6 }
 0x159   : >> { %1729 = vmatprep.subr.mxu0 %v2128_v37  ;;  %1731 = vmatprep.mubr.msk.f32.mxu0 %vm2129_vm4, %v2128_v37  ;;  %v1476_v37 = vld [vmem:[#allocation19 + $0x8] sm:$0xff] (%p916_p1) }
 0x15a   : >> { %1730 = vmatpush3.msra.mxu0 %v2373_v5  ;;  %1734 = vmatprep.subr.mxu1 (%p916_p1), %v2403_v11 }
 0x15b   : >> { %1732 = vmatmul.mubr.msk.f32.vlgmr.msra.gmra.mxu0 %vm739_vm3, %v920_v38  ;;  %1735 = vmatpush3.msra.mxu1 (%p916_p1), %v2403_v11 }
 0x15c   : > { %1736 = vmatprep.subr.mxu1 (%p916_p1), %v2398_v10 }
 0x15d   : > { %1737 = vmatpush3.msra.mxu1 (%p916_p1), %v2398_v10 }
 0x15e   : > { %1741 = vmatprep.subr.mxu1 (%p916_p1), %v2407_v13 }
 0x216   : >> { %v990_v39 = vpop.f32.mrf.mxu0 }
 0x217   : >> { %v991_v41 = vadd.f32 %v990_v39, %v2383_v7 }
 0x218   : >> { %v1719_v42 = vpop.f32.mrf.mxu0  ;;  %v1060_v43 = vpop.f32.mrf.mxu1 }
 0x219   : >> { %v1136_v44 = vadd.f32 %v1135_v40, %v991_v41  ;;  %v1061_v45 = vadd.f32 %v1060_v43, %v2388_v8 }
 0x21a   : >> { %v1726_v47 = vpop.f32.mrf.mxu1 }
 0x21b   : >> { %v1650_v48 = vmul.f32 -1.442695, %v1136_v44  ;;  %v1130_v49 = vpop.f32.mrf.mxu0  ;;  %v1145_v50 = vadd.f32 %v1144_v46, %v1061_v45 }
 0x21c   : >> { %v1131_v57 = vadd.f32 %v1130_v49, %v2393_v9 }
 0x21d   : >> { %1857 = vpow2.f32 %v1650_v48  ;;  %v1733_v51 = vpop.f32.mrf.mxu0  ;;  %v1651_v52 = vmul.f32 -1.442695, %v1145_v50 }
 0x21f   : >> { %1859 = vpow2.f32 %v1651_v52 }
 0x22a   : >> { %v1858_v53 = vpop.eup %1857 }
 0x22b   : >> { %v1140_v54 = vadd.f32 1.0, %v1858_v53 }
 0x22c   : >> { %v1860_v55 = vpop.eup %1859 }
 0x22d   : >> { %1861 = vrcp.f32 %v1140_v54  ;;  %v1149_v56 = vadd.f32 1.0, %v1860_v55 }
 0x22f   : >> { %1863 = vrcp.f32 %v1149_v56 }
 0x23a   : >> { %v1862_v58 = vpop.eup %1861 }
 0x23b   : >> { %v1154_v60 = vmul.f32 %v1862_v58, %v1131_v57 }
 0x23c   : >> { %v1864_v62 = vpop.eup %1863 }
 0x23d   : >> { %v1155_v61 = vadd.f32 %v1154_v60, %v1153_v59  ;;  %v1157_v63 = vsub.f32 1.0, %v1864_v62  ;;  %v1159_v16 = vmul.f32 %v1864_v62, %v920_v38 }
 0x23f   : >> { %1865 = vtanh.f32 %v1155_v61 }
 0x24c   : >> { %v1866_v0 = vpop.eup %1865 }
 0x24d   : >> { %v1158_v17 = vmul.f32 %v1866_v0, %v1157_v63  ;;  %918 = sbr.rel (!%p916_p1) target bundleno = 337 (0x151), region = 163 }
 0x24f   : >> { %v1160_v18 = vadd.f32 %v1159_v16, %v1158_v17 }
 0x251   : >> { %1161 = vst.msk [vmem:[#allocation6] sm:$0x1] %vm912_vm2, %v1160_v18  ;;  %1163 = vst.msk [vmem:[%s1162_s20] sm:$0x1] %vm912_vm2, %v1160_v18 }
 0x258   : > { %v1164_v19 = vld [vmem:[#allocation5] sm:$0xff]  ;;  %v1165_v20 = vld [vmem:[#allocation5 + $0x8] sm:$0xff] }
 0x259   : > { %1166 = vxpose.xlu0.b32.start [1/2] (short) (narrow) %v1164_v19, 16 }
 0x25d   : > { %1167 = vxpose.xlu0.b32.end [2/2] (short) (narrow) %v1165_v20, 16 }
 0x2d5   : > { %v1182_v21 = vpop.trf.xlu0 }
 0x2d6   : > { %1738 = vmatprep.mubr.msk.f32.mxu1 %vm739_vm3, %v1182_v21 }
 0x2d9   : > { %v1183_v22 = vpop.trf.xlu0 }
 0x2da   : > { %1739 = vmatmul.mubr.msk.f32.vlgmr.msra.gmra.mxu1 %vm739_vm3, %v1183_v22 }
 0x2db   : > { %1742 = vmatpush3.msra.mxu1 %v2407_v13  ;;  %1745 = vmatprep.mubr.msk.f32.mxu1 %vm739_vm3, %v1182_v21 }
 0x2dc   : > { %1743 = vmatprep.subr.mxu1 %v2405_v12 }
 0x2dd   : > { %1744 = vmatpush3.msra.mxu1 %v2405_v12 }
 0x2de   : > { %1746 = vmatmul.mubr.msk.f32.vlgmr.msra.gmra.mxu1 %vm739_vm3, %v1183_v22 }
 0x39a   : > { %v1740_v1 = vpop.f32.mrf.mxu1 }
 0x39b   : > { %v1282_v2 = vadd.f32 %v1740_v1, %v2412_v14 }
 0x39c   : > { %v1276_v3 = vpop.f32.mrf.mxu1 }
 0x39d   : > { %v1277_v4 = vadd.f32 %v2412_v14, %v1276_v3  ;;  %1748 = vmatprep.subr.msk.mxu0 %vm739_vm3, %v1282_v2 }
 0x39e   : > { %v1747_v5 = vpop.f32.mrf.mxu1  ;;  %1749 = vmatpush3.xpose.msk.msra.mxu0 %vm739_vm3, %v1282_v2 }
 0x39f   : > { %1750 = vmatprep.subr.msk.mxu0 %vm739_vm3, %v1277_v4  ;;  %v1363_v8 = vadd.f32 %v1747_v5, %v2417_v15 }
 0x3a0   : > { %v1357_v6 = vpop.f32.mrf.mxu1 }
 0x3a1   : > { %v1358_v7 = vadd.f32 %v2417_v15, %v1357_v6 }
 0x3a2   : > { %1751 = vmatpush3.xpose.msk.msra.mxu0 %vm739_vm3, %v1277_v4 }
 0x3a3   : > { %1752 = vmatprep.mubr.msk.f32.mxu0 %vm739_vm3, %v1358_v7 }
 0x3a5   : > { %1753 = vmatmul.mubr.msk.f32.vlgmr.msra.gmra.mxu0 %vm739_vm3, %v1363_v8 }
 0x465   : > { %v1754_v9 = vpop.f32.mrf.mxu0 }
 0x466   : > { %v1456_v12 = vsel %vm739_vm3, %v1754_v9, -inf }
 0x467   : > { %v1444_v10 = vpop.f32.mrf.mxu0 }
 0x468   : > { %v1453_v11 = vsel %vm739_vm3, %v1444_v10, -inf }
 0x469   : > { %1454 = vmax.xlane.f32.xlu1 %v1453_v11 }
 0x46d   : > { %1457 = vmax.xlane.f32.xlu1 %v1456_v12 }
 0x4f2   : > { %v1455_v13 = vpop.xlane.xlu1 %1454 }
 0x4f3   : > { %v1459_v14 = vsub.f32 %v1444_v10, %v1455_v13 }
 0x4f5   : > { %v1461_v23 = vmul.f32 1.442695, %v1459_v14 }
 0x4f6   : > { %v1458_v24 = vpop.xlane.xlu1 %1457 }
 0x4f7   : > { %1867 = vpow2.f32 %v1461_v23  ;;  %v1460_v25 = vsub.f32 %v1754_v9, %v1458_v24 }
 0x4f9   : > { %v1463_v26 = vmul.f32 1.442695, %v1460_v25 }
 0x4fb   : > { %1869 = vpow2.f32 %v1463_v26 }
 0x504   : > { %v1868_v15 = vpop.eup %1867 }
 0x505   : > { %v1465_v27 = vsel %vm739_vm3, %v1868_v15, 0.0 }
 0x506   : > { %1466 = vadd.xlane.f32.xlu0 %v1465_v27 }
 0x508   : > { %v1870_v28 = vpop.eup %1869 }
 0x509   : > { %v1468_v29 = vsel %vm739_vm3, %v1870_v28, 0.0 }
 0x50a   : > { %1469 = vadd.xlane.f32.xlu1 %v1468_v29 }
 0x58f   : > { %v1467_v30 = vpop.xlane.xlu0 %1466 }
 0x590   : > { %1871 = vrcp.f32 %v1467_v30 }
 0x593   : > { %v1470_v31 = vpop.xlane.xlu1 %1469 }
 0x594   : > { %1873 = vrcp.f32 %v1470_v31 }
 0x59d   : > { %v1872_v32 = vpop.eup %1871 }
 0x59e   : > { %v1473_v34 = vmul.f32 %v1872_v32, %v1868_v15 }
 0x5a0   : > { %v1477_v35 = vadd.f32 %v1475_v33, %v1473_v34 }
 0x5a1   : > { %v1874_v36 = vpop.eup %1873 }
 0x5a2   : > { %1479 = vst.msk [vmem:[#allocation19] sm:$0xff] %vm739_vm3, %v1477_v35  ;;  %v1474_v38 = vmul.f32 %v1874_v36, %v1870_v28  ;;  %1484 = sbr.rel (%p1662_p5) target bundleno = 1457 (0x5b1), region = 131 }
 0x5a4   : > { %v1478_v39 = vadd.f32 %v1476_v37, %v1474_v38 }
 0x5a6   : > { %1480 = vst.msk [vmem:[#allocation19 + $0x8] sm:$0xff] %vm739_vm3, %v1478_v39 }
 0x5a9   : > { %v1485_v40 = vld [vmem:[#allocation19] sm:$0xff] }
 0x5aa   : > { %v1487_v42 = vmul.f32 0.5, %v1485_v40 }
 0x5ac   : > { %1489 = vst.msk [vmem:[#allocation19] sm:$0xff] %vm739_vm3, %v1487_v42 }
 0x5ad   : > { %v1486_v41 = vld [vmem:[#allocation19 + $0x8] sm:$0xff] }
 0x5ae   : > { %v1488_v43 = vmul.f32 0.5, %v1486_v41 }
 0x5b0   : > { %1490 = vst.msk [vmem:[#allocation19 + $0x8] sm:$0xff] %vm739_vm3, %v1488_v43 }
 0x5b1 PF: > { %p1823_p8 = scmp.eq.s32.totalorder %s2229_s27, 1  ;;  %s2130_s1 = smov [#allocation19]  }
 0x5b2   : > { %s1497_s28 = sshll.u32 %s2130_s1, 4  ;;  %s1498_s28 = int_to_ptr.vmem [resolvable:$true] %s1497_s28 }
 0x5b3   : > { %s2057_s19 = scalar_lea.vmem %s1498_s28, 256  ;;  %p2064_p9 = scmp.lt.s32.totalorder %s1498_s28, %s1498_s28 }
 0x5b4   : > { %p2058_p2 = scmp.ne.s32.totalorder %s1498_s28, %s2057_s19  ;;  %p2065_p10 = scmp.lt.s32.totalorder %s2057_s19, %s2057_s19 }
 0x5b6   : > { %p2059_p3 = pnand %p2058_p2, %p1823_p8  ;;  %p2066_p12 = por %p2065_p10, %p2064_p9 }
 0x5b8   : > { %p2060_p7 = pneg %p2059_p3 }
 0x5ba   : > { %p2067_p6 = pnand %p2066_p12, %p2060_p7 }
 0x5bc   : > { %2070 = shalt.err (!%p2067_p6)
}
 0x5bd   : > { %s2131_s21 = smov 128   ;;  %s2132_s25 = smov 8  }
 0x5be   : > { %1784 = dma.vmem_to_hbm [thread:$0]  (%p1823_p8), %s1498_s28, 256, %s2524_s17, [#allocation9], %s2131_s21, %s2131_s21, %s2132_s25  }
 0x5bf   : > { %2106 = dma.done.wait (%p1823_p8), [#allocation9], 256  }
 0x5c0   : > { %2108 = vsyncadd (%p1823_p8), [#allocation9], 4294967040 }
 0x5c1 PF: > { %s32_s24 = sadd.s32 1, %s2111_s24  }
 0x5c2   : > { %p29_p4 = scmp.ge.s32.totalorder %s32_s24, 4  }
 0x5c4   :  { %31 = sbr.rel (!%p29_p4) target bundleno = 8 (0x8), region = 174 }
 0x5c9   :  { %1513 = vsyncpa [#allocation8], 1 }
 0x5ca   :  { %1515 = vsyncpa [#allocation8 + $0x1], 1 }
 0x5cb   :  { %1516 = vsyncpa [#allocation11], 1 }
 0x5cc   :  { %1517 = vsyncpa [#allocation14], 1 }
 0x5cd   :  { %1518 = vsyncpa [#allocation17], 1 }
 0x5ce   :  { %1519 = vsyncpa [#allocation9], 1 }
 0x5cf   :  { %1521 = vsyncpa [#allocation9 + $0x1], 1 }

</bundles_post_ra>
